<compile_context>
chip_gen: v7x
topology: tpu7x:2x2x1
jax: 0.10.0
libtpu: 0.0.40
codegen_flags: <defaults>
</compile_context>

<pallas_src>
import functools

import jax
import jax.numpy as jnp
from jax.experimental import pallas as pl
from jax.experimental.pallas import tpu as pltpu

_SUBLANE = 8              # f32 sublane width
_SMALL_BATCH = 1024       # below this, use a single grid step


def _round_up(x: int, m: int) -> int:
    return ((x + m - 1) // m) * m


def actor_kernel(x_ref, w1_ref, b1_ref, w2_ref, b2_ref, w3_ref, b3_ref, o_ref,
                 *, negate: bool):
    # x tile arrives in its source dtype (f32); cast to bf16 for the MXU here
    # (one cheap VPU convert per tile, hidden under DMA).
    x = x_ref[...].astype(jnp.bfloat16)

    h1 = jnp.dot(x, w1_ref[...], preferred_element_type=jnp.float32) + b1_ref[...]
    h1 = jnp.maximum(h1, 0.0).astype(jnp.bfloat16)

    h2 = jnp.dot(h1, w2_ref[...], preferred_element_type=jnp.float32) + b2_ref[...]
    h2 = jnp.maximum(h2, 0.0).astype(jnp.bfloat16)

    h3 = jnp.dot(h2, w3_ref[...], preferred_element_type=jnp.float32) + b3_ref[...]
    out = jnp.maximum(h3, 0.0)              # |max_response| already folded into w3/b3
    if negate:                              # sign of a negative max_response
        out = -out
    o_ref[...] = out.astype(o_ref.dtype)


def prepare_actor_params(params, max_response: float):
    """One-time conversion of raw params to kernel-ready arrays.

    bf16 weights, f32 row-biases, |max_response| folded into fc3 (valid since
    c*relu(z) == sign(c) * relu(|c|*z)); the sign is applied inside the kernel.
    """
    w1, b1 = params["w1"], params["b1"]
    w2, b2 = params["w2"], params["b2"]
    w3, b3 = params["w3"], params["b3"]
    D, H = w1.shape
    R = w3.shape[1]

    mr = float(max_response)
    scale = abs(mr)
    negate = mr < 0.0

    return {
        "w1": w1.astype(jnp.bfloat16),
        "b1": b1.reshape(1, H).astype(jnp.float32),
        "w2": w2.astype(jnp.bfloat16),
        "b2": b2.reshape(1, H).astype(jnp.float32),
        "w3": (w3 * scale).astype(jnp.bfloat16),
        "b3": (b3 * scale).reshape(1, R).astype(jnp.float32),
        "demand_dim": D,
        "hidden": H,
        "response_dim": R,
        "negate": negate,
    }


def actor_forward(state, prep, *, batch_tile: int = 2048, out_dtype=jnp.float32):
    """Actor MLP forward as a single batch-gridded Pallas kernel.

    state: (B, demand_dim) float array (f32 is fine; cast happens in-kernel).
    prep:  output of prepare_actor_params.
    out_dtype: jnp.float32 (default, matches reference) or jnp.bfloat16 to halve
               output writeback bytes.
    """
    B, D = state.shape
    assert D == prep["demand_dim"]
    H = prep["hidden"]
    R = prep["response_dim"]

    if B <= _SMALL_BATCH:
        # Single grid step; block == full array dims (legal for any B, no padding).
        TB = B
        grid = (1,)
    else:
        # Large batches: big tiles (multiple of 8) to amortize per-step overhead,
        # capped so there are >= 2 grid steps (keeps both v7x TensorCores busy).
        TB = min(_round_up(batch_tile, _SUBLANE),
                 _round_up(pl.cdiv(B, 2), _SUBLANE))
        TB = max(TB, _SUBLANE)
        grid = (pl.cdiv(B, TB),)

    resident = lambda shape: pl.BlockSpec(shape, lambda i: (0, 0))
    kernel = functools.partial(actor_kernel, negate=prep["negate"])

    out = pl.pallas_call(
        kernel,
        out_shape=jax.ShapeDtypeStruct((B, R), out_dtype),
        grid=grid,
        in_specs=[
            pl.BlockSpec((TB, D), lambda i: (i, 0)),   # streamed batch tile (ragged ok)
            resident((D, H)),                          # w1 (VMEM-resident)
            resident((1, H)),                          # b1
            resident((H, H)),                          # w2
            resident((1, H)),                          # b2
            resident((H, R)),                          # w3 (un-padded, |c| folded)
            resident((1, R)),                          # b3
        ],
        out_specs=pl.BlockSpec((TB, R), lambda i: (i, 0)),
        compiler_params=pltpu.CompilerParams(
            dimension_semantics=("parallel",),         # v7x: shard batch over 2 TCs
        ),
    )(state, prep["w1"], prep["b1"], prep["w2"], prep["b2"], prep["w3"], prep["b3"])

    return out


def init_actor_params(key, demand_dim: int, response_dim: int, hidden: int = 128):
    """Deterministic init mimicking PyTorch nn.Linear's U(-1/sqrt(fan_in), 1/sqrt(fan_in))."""
    ks = jax.random.split(key, 6)

    def linear(kw, kb, fan_in, fan_out):
        bound = 1.0 / jnp.sqrt(fan_in)
        w = jax.random.uniform(kw, (fan_in, fan_out), jnp.float32, -bound, bound)
        b = jax.random.uniform(kb, (fan_out,), jnp.float32, -bound, bound)
        return w, b

    w1, b1 = linear(ks[0], ks[1], demand_dim, hidden)
    w2, b2 = linear(ks[2], ks[3], hidden, hidden)
    w3, b3 = linear(ks[4], ks[5], hidden, response_dim)
    return {"w1": w1, "b1": b1, "w2": w2, "b2": b2, "w3": w3, "b3": b3}


def actor_forward_ref(state, params, max_response: float):
    """Pure-JAX reference mirroring the kernel numerics (bf16 ops, f32 accumulate)."""
    x = state.astype(jnp.bfloat16)
    h1 = jnp.dot(x, params["w1"].astype(jnp.bfloat16),
                 preferred_element_type=jnp.float32) + params["b1"]
    h1 = jnp.maximum(h1, 0.0).astype(jnp.bfloat16)
    h2 = jnp.dot(h1, params["w2"].astype(jnp.bfloat16),
                 preferred_element_type=jnp.float32) + params["b2"]
    h2 = jnp.maximum(h2, 0.0).astype(jnp.bfloat16)
    h3 = jnp.dot(h2, params["w3"].astype(jnp.bfloat16),
                 preferred_element_type=jnp.float32) + params["b3"]
    return max_response * jnp.maximum(h3, 0.0)


if __name__ == "__main__":
    demand_dim = 16
    response_dim = 8
    max_response = 2.0

    key = jax.random.PRNGKey(0)
    k_params, k_state_small, k_state_big = jax.random.split(key, 3)

    params = init_actor_params(k_params, demand_dim, response_dim)
    prep = prepare_actor_params(params, max_response)

    # Small-batch path (single grid step), the module's typical RL-inference case.
    state_small = jax.random.normal(k_state_small, (2, demand_dim), jnp.float32)
    out_small = jax.block_until_ready(actor_forward(state_small, prep))
    ref_small = actor_forward_ref(state_small, params, max_response)
    assert out_small.shape == (2, response_dim)
    assert jnp.allclose(out_small, ref_small, atol=1e-2, rtol=1e-2), \
        "Pallas output mismatch vs reference (small batch)"

    # Large-batch path (pipelined, ragged last block) to exercise the tiled grid.
    state_big = jax.random.normal(k_state_big, (2500, demand_dim), jnp.float32)
    out_big = jax.block_until_ready(actor_forward(state_big, prep, batch_tile=1024))
    ref_big = actor_forward_ref(state_big, params, max_response)
    assert out_big.shape == (2500, response_dim)
    assert jnp.allclose(out_big, ref_big, atol=1e-2, rtol=1e-2), \
        "Pallas output mismatch vs reference (large batch)"

    print("KERNEL_OK")
</pallas_src>

<mosaic_0001>
module attributes {stable_mosaic.version = 11 : i64} {
  func.func @actor_kernel(%arg0: i32, %arg1: memref<2x16xf32, #tpu.memory_space<vmem>>, %arg2: memref<16x128xbf16, #tpu.memory_space<vmem>>, %arg3: memref<1x128xf32, #tpu.memory_space<vmem>>, %arg4: memref<128x128xbf16, #tpu.memory_space<vmem>>, %arg5: memref<1x128xf32, #tpu.memory_space<vmem>>, %arg6: memref<128x8xbf16, #tpu.memory_space<vmem>>, %arg7: memref<1x8xf32, #tpu.memory_space<vmem>>, %arg8: memref<2x8xf32, #tpu.memory_space<vmem>>) attributes {dimension_semantics = [#tpu.dimension_semantics<parallel>], iteration_bounds = array<i64: 1>, scalar_prefetch = 0 : i64, scratch_operands = 0 : i64, tpu.core_type = #tpu.core_type<tc>, window_params = [{transform_indices = @transform_0, window_bounds = array<i64: 2, 16>}, {pipeline_mode = #tpu.pipeline_mode<synchronous>, transform_indices = @transform_1, window_bounds = array<i64: 16, 128>}, {pipeline_mode = #tpu.pipeline_mode<synchronous>, transform_indices = @transform_2, window_bounds = array<i64: 1, 128>}, {pipeline_mode = #tpu.pipeline_mode<synchronous>, transform_indices = @transform_3, window_bounds = array<i64: 128, 128>}, {pipeline_mode = #tpu.pipeline_mode<synchronous>, transform_indices = @transform_4, window_bounds = array<i64: 1, 128>}, {pipeline_mode = #tpu.pipeline_mode<synchronous>, transform_indices = @transform_5, window_bounds = array<i64: 128, 8>}, {pipeline_mode = #tpu.pipeline_mode<synchronous>, transform_indices = @transform_6, window_bounds = array<i64: 1, 8>}, {transform_indices = @transform_7, window_bounds = array<i64: 2, 8>}]} {
    %c0 = arith.constant 0 : index
    %c0_0 = arith.constant 0 : index
    %0 = vector.load %arg1[%c0, %c0_0] : memref<2x16xf32, #tpu.memory_space<vmem>>, vector<2x16xf32>
    %1 = arith.truncf %0 : vector<2x16xf32> to vector<2x16xbf16>
    %c0_1 = arith.constant 0 : index
    %c0_2 = arith.constant 0 : index
    %2 = vector.load %arg2[%c0_1, %c0_2] : memref<16x128xbf16, #tpu.memory_space<vmem>>, vector<16x128xbf16>
    %cst = arith.constant dense<0.000000e+00> : vector<2x128xf32>
    %3 = tpu.matmul %1, %2, %cst {dimension_numbers = #tpu.dot_dimension_numbers<[1], [0], [0], [1], [0, 0, 1, 1], [], []>} : vector<2x16xbf16>, vector<16x128xbf16>, vector<2x128xf32> -> vector<2x128xf32>
    %c0_3 = arith.constant 0 : index
    %c0_4 = arith.constant 0 : index
    %4 = vector.load %arg3[%c0_3, %c0_4] : memref<1x128xf32, #tpu.memory_space<vmem>>, vector<1x128xf32>
    %5 = vector.broadcast %4 : vector<1x128xf32> to vector<2x128xf32>
    %6 = arith.addf %3, %5 : vector<2x128xf32>
    %cst_5 = arith.constant 0.000000e+00 : f32
    %7 = vector.broadcast %cst_5 : f32 to vector<2x128xf32>
    %8 = arith.maximumf %6, %7 : vector<2x128xf32>
    %9 = arith.truncf %8 : vector<2x128xf32> to vector<2x128xbf16>
    %c0_6 = arith.constant 0 : index
    %c0_7 = arith.constant 0 : index
    %10 = vector.load %arg4[%c0_6, %c0_7] : memref<128x128xbf16, #tpu.memory_space<vmem>>, vector<128x128xbf16>
    %cst_8 = arith.constant dense<0.000000e+00> : vector<2x128xf32>
    %11 = tpu.matmul %9, %10, %cst_8 {dimension_numbers = #tpu.dot_dimension_numbers<[1], [0], [0], [1], [0, 0, 1, 1], [], []>} : vector<2x128xbf16>, vector<128x128xbf16>, vector<2x128xf32> -> vector<2x128xf32>
    %c0_9 = arith.constant 0 : index
    %c0_10 = arith.constant 0 : index
    %12 = vector.load %arg5[%c0_9, %c0_10] : memref<1x128xf32, #tpu.memory_space<vmem>>, vector<1x128xf32>
    %13 = vector.broadcast %12 : vector<1x128xf32> to vector<2x128xf32>
    %14 = arith.addf %11, %13 : vector<2x128xf32>
    %cst_11 = arith.constant 0.000000e+00 : f32
    %15 = vector.broadcast %cst_11 : f32 to vector<2x128xf32>
    %16 = arith.maximumf %14, %15 : vector<2x128xf32>
    %17 = arith.truncf %16 : vector<2x128xf32> to vector<2x128xbf16>
    %c0_12 = arith.constant 0 : index
    %c0_13 = arith.constant 0 : index
    %18 = vector.load %arg6[%c0_12, %c0_13] : memref<128x8xbf16, #tpu.memory_space<vmem>>, vector<128x8xbf16>
    %cst_14 = arith.constant dense<0.000000e+00> : vector<2x8xf32>
    %19 = tpu.matmul %17, %18, %cst_14 {dimension_numbers = #tpu.dot_dimension_numbers<[1], [0], [0], [1], [0, 0, 1, 1], [], []>} : vector<2x128xbf16>, vector<128x8xbf16>, vector<2x8xf32> -> vector<2x8xf32>
    %c0_15 = arith.constant 0 : index
    %c0_16 = arith.constant 0 : index
    %20 = vector.load %arg7[%c0_15, %c0_16] : memref<1x8xf32, #tpu.memory_space<vmem>>, vector<1x8xf32>
    %21 = vector.broadcast %20 : vector<1x8xf32> to vector<2x8xf32>
    %22 = arith.addf %19, %21 : vector<2x8xf32>
    %cst_17 = arith.constant 0.000000e+00 : f32
    %23 = vector.broadcast %cst_17 : f32 to vector<2x8xf32>
    %24 = arith.maximumf %22, %23 : vector<2x8xf32>
    %c0_18 = arith.constant 0 : index
    %c0_19 = arith.constant 0 : index
    %25 = vector.load %arg8[%c0_18, %c0_19] : memref<2x8xf32, #tpu.memory_space<vmem>>, vector<2x8xf32>
    tpu.vector_store %arg8[%c0_18, %c0_19], %24 {strides = array<i32>} : memref<2x8xf32, #tpu.memory_space<vmem>>, vector<2x8xf32>,
    return
  }
  func.func @transform_0(%arg0: i32) -> (i32, i32) {
    %c0_i32 = arith.constant 0 : i32
    %c0_i32_0 = arith.constant 0 : i32
    return %arg0, %c0_i32 : i32, i32
  }
  func.func @transform_1(%arg0: i32) -> (i32, i32) {
    %c0_i32 = arith.constant 0 : i32
    %c0_i32_0 = arith.constant 0 : i32
    %c0_i32_1 = arith.constant 0 : i32
    return %c0_i32, %c0_i32_0 : i32, i32
  }
  func.func @transform_2(%arg0: i32) -> (i32, i32) {
    %c0_i32 = arith.constant 0 : i32
    %c0_i32_0 = arith.constant 0 : i32
    %c0_i32_1 = arith.constant 0 : i32
    return %c0_i32, %c0_i32_0 : i32, i32
  }
  func.func @transform_3(%arg0: i32) -> (i32, i32) {
    %c0_i32 = arith.constant 0 : i32
    %c0_i32_0 = arith.constant 0 : i32
    %c0_i32_1 = arith.constant 0 : i32
    return %c0_i32, %c0_i32_0 : i32, i32
  }
  func.func @transform_4(%arg0: i32) -> (i32, i32) {
    %c0_i32 = arith.constant 0 : i32
    %c0_i32_0 = arith.constant 0 : i32
    %c0_i32_1 = arith.constant 0 : i32
    return %c0_i32, %c0_i32_0 : i32, i32
  }
  func.func @transform_5(%arg0: i32) -> (i32, i32) {
    %c0_i32 = arith.constant 0 : i32
    %c0_i32_0 = arith.constant 0 : i32
    %c0_i32_1 = arith.constant 0 : i32
    return %c0_i32, %c0_i32_0 : i32, i32
  }
  func.func @transform_6(%arg0: i32) -> (i32, i32) {
    %c0_i32 = arith.constant 0 : i32
    %c0_i32_0 = arith.constant 0 : i32
    %c0_i32_1 = arith.constant 0 : i32
    return %c0_i32, %c0_i32_0 : i32, i32
  }
  func.func @transform_7(%arg0: i32) -> (i32, i32) {
    %c0_i32 = arith.constant 0 : i32
    %c0_i32_0 = arith.constant 0 : i32
    return %arg0, %c0_i32 : i32, i32
  }
}

</mosaic_0001>

<bundles_post_ra>
// kernel: tpu_custom_call.1
= control target key start
LH: loop header
LB: loop body
LE: loop exit
PB: predicated region body
PF: predicated region fallthrough
CT: control target
= control target key end

     0   :  { %v463_v1 = vmov 0.0   ;;  %vm464_vm0 = vmmov 0   ;;  %vm45_vm1 = vcmask 130048   ;;  %s601_s0 = inlined_call_operand.vmem [shape: f32[2,16], index: 0, kind: input, shape index: {}]   ;;  %s602_s1 = inlined_call_operand.vmem [shape: bf16[16,128], index: 1, kind: input, shape index: {}]   ;;  %s603_s2 = inlined_call_operand.vmem [shape: f32[1,128], index: 2, kind: input, shape index: {}]   ;;  %s604_s3 = inlined_call_operand.vmem [shape: bf16[128,128], index: 3, kind: input, shape index: {}]   ;;  %s605_s4 = inlined_call_operand.vmem [shape: f32[1,128], index: 4, kind: input, shape index: {}]   ;;  %s606_s5 = inlined_call_operand.vmem [shape: bf16[128,8], index: 5, kind: input, shape index: {}]   ;;  %s607_s6 = inlined_call_operand.vmem [shape: f32[1,8], index: 6, kind: input, shape index: {}]   ;;  %s608_s7 = inlined_call_operand.hbm [shape: f32[2,8], index: 7, kind: output, shape index: {}]  }
   0x1   :  { %v422_v0 = vld [vmem:[%s602_s1] sm:$0xff]   ;;  %373 = vmatprep.subr.bf16.mxu0 %v463_v1  ;;  %379 = vmatprep.subr.bf16.mxu1 %v463_v1  ;;  %v424_v5 = vld [vmem:[%s604_s3 + $0x8] sm:$0xff]   ;;  %v425_v6 = vld [vmem:[%s604_s3 + $0x10] sm:$0xff]  }
   0x2   :  { %v28_v2 = vld [vmem:[%s601_s0] sm:$0x3]  ;;  %374 = vmatpush3.bf16.msra.mxu0 %v422_v0  ;;  %375 = vmatprep.mubr.msk.bf16.mxu0 %vm464_vm0, %v463_v1  ;;  %v426_v7 = vld [vmem:[%s604_s3 + $0x18] sm:$0xff]  }
   0x3   :  { %v29_v3 = vpack.c.bf16 %v28_v2, %v28_v2  ;;  %v423_v4 = vld [vmem:[%s604_s3] sm:$0xff]   ;;  %395 = vmatprep.mubr.msk.bf16.mxu1 %vm464_vm0, %v463_v1  ;;  %399 = vmatprep.subr.bf16.mxu0 %v463_v1 }
   0x4   :  { %380 = vmatpush3.bf16.msra.mxu1 %v423_v4 }
   0x5   :  { %376 = vmatmul.mubr.msk.bf16.vlgmr.msra.gmra.mrb[0].mxu0 %vm45_vm1, %v29_v3  ;;  %381 = vmatprep.subr.bf16.mxu1 %v463_v1 }
   0x6   :  { %415 = vmatprep.mubr.msk.bf16.mxu0 %vm464_vm0, %v463_v1 }
   0x8   :  { %382 = vmatpush3.bf16.msra.mxu1 %v424_v5 }
   0x9   :  { %383 = vmatprep.subr.bf16.mxu1 %v463_v1 }
   0xc   :  { %384 = vmatpush3.bf16.msra.mxu1 %v425_v6 }
   0xd   :  { %385 = vmatprep.subr.bf16.mxu1 %v463_v1 }
   0xe   :  { %12 = vsyncpa [#allocation3], 0  ;;  %v427_v8 = vld [vmem:[%s604_s3 + $0x20] sm:$0xff]   ;;  %v428_v9 = vld [vmem:[%s604_s3 + $0x28] sm:$0xff]   ;;  %s465_s14 = smov [#allocation2]   ;;  %vm316_vm2 = vcmask 58368  }
   0xf   :  { %v429_v10 = vld [vmem:[%s604_s3 + $0x30] sm:$0xff]   ;;  %v430_v11 = vld [vmem:[%s604_s3 + $0x38] sm:$0xff]   ;;  %v431_v12 = vld [vmem:[%s606_s5] sm:$0xff]  }
  0x10   :  { %386 = vmatpush3.bf16.msra.mxu1 %v426_v7  ;;  %400 = vmatpush3.bf16.msra.mxu0 %v431_v12  ;;  %v432_v13 = vld [vmem:[%s606_s5 + $0x8] sm:$0xff]   ;;  %v433_v14 = vld [vmem:[%s606_s5 + $0x10] sm:$0xff]   ;;  %v434_v15 = vld [vmem:[%s606_s5 + $0x18] sm:$0xff]  }
  0x11   :  { %387 = vmatprep.subr.bf16.mxu1 %v463_v1  ;;  %401 = vmatprep.subr.bf16.mxu0 %v463_v1  ;;  %v435_v16 = vld [vmem:[%s606_s5 + $0x20] sm:$0xff]   ;;  %v436_v17 = vld [vmem:[%s606_s5 + $0x28] sm:$0xff]   ;;  %v437_v26 = vld [vmem:[%s606_s5 + $0x30] sm:$0xff]  }
  0x12   :  { %v332_v18 = vld [vmem:[%s603_s2] ss:$0 sm:$0xff]  ;;  %v438_v27 = vld [vmem:[%s606_s5 + $0x38] sm:$0xff]   ;;  %s324_s5 = sshll.u32 %s465_s14, 4  ;;  %s325_s5 = int_to_ptr.vmem [resolvable:$true] %s324_s5 }
  0x13   :  { %v335_v28 = vld [vmem:[%s605_s4] ss:$0 sm:$0xff]  ;;  %s439_s4 = scalar_lea.vmem %s325_s5, 32  ;;  %p444_p1 = scmp.lt.s32.totalorder %s325_s5, %s325_s5 }
  0x14   :  { %388 = vmatpush3.bf16.msra.mxu1 %v427_v8  ;;  %402 = vmatpush3.bf16.msra.mxu0 %v432_v13  ;;  %v344_v36 = vld [vmem:[%s607_s6] ss:$0 sm:$0xff]  ;;  %p440_p0 = scmp.ne.s32.totalorder %s325_s5, %s439_s4  ;;  %p445_p2 = scmp.lt.s32.totalorder %s439_s4, %s439_s4 }
  0x15   :  { %389 = vmatprep.subr.bf16.mxu1 %v463_v1  ;;  %403 = vmatprep.subr.bf16.mxu0 %v463_v1 }
  0x16   :  { %p446_p3 = por %p445_p2, %p444_p1 }
  0x18   :  { %390 = vmatpush3.bf16.msra.mxu1 %v428_v9  ;;  %404 = vmatpush3.bf16.msra.mxu0 %v433_v14  ;;  %p447_p4 = pnand %p446_p3, %p440_p0 }
  0x19   :  { %391 = vmatprep.subr.bf16.mxu1 %v463_v1  ;;  %405 = vmatprep.subr.bf16.mxu0 %v463_v1 }
  0x1c   :  { %392 = vmatpush3.bf16.msra.mxu1 %v429_v10  ;;  %406 = vmatpush3.bf16.msra.mxu0 %v434_v15 }
  0x1d   :  { %393 = vmatprep.subr.bf16.mxu1 %v463_v1  ;;  %407 = vmatprep.subr.bf16.mxu0 %v463_v1 }
  0x20   :  { %394 = vmatpush3.bf16.msra.mxu1 %v430_v11  ;;  %408 = vmatpush3.bf16.msra.mxu0 %v435_v16 }
  0x21   :  { %409 = vmatprep.subr.bf16.mxu0 %v463_v1 }
  0x24   :  { %410 = vmatpush3.bf16.msra.mxu0 %v436_v17 }
  0x25   :  { %411 = vmatprep.subr.bf16.mxu0 %v463_v1 }
  0x28   :  { %412 = vmatpush3.bf16.msra.mxu0 %v437_v26 }
  0x29   :  { %413 = vmatprep.subr.bf16.mxu0 %v463_v1 }
  0x2c   :  { %414 = vmatpush3.bf16.msra.mxu0 %v438_v27 }
  0xd8   :  { %v83_v19 = vpop.f32.mrb[0].mxu0 }
  0xd9   :  { %v84_v20 = vadd.f32 %v332_v18, %v83_v19  ;;  %v377_v21 = vpop.f32.mrb[1].mxu0 }
  0xda   :  { %v86_v22 = vpop.f32.mrb[2].mxu0 }
  0xdb   :  { %v89_v23 = vmax.f32 %v84_v20, 0.0  ;;  %v378_v24 = vpop.f32.mrb[3].mxu0 }
  0xdd   :  { %v90_v25 = vpack.c.bf16 %v89_v23, %v89_v23 }
  0xdf   :  { %396 = vmatmul.mubr.bf16.vlgmr.msra.gmra.mrb[0].mxu1 %v90_v25 }
 0x1b2   :  { %v196_v29 = vpop.f32.mrb[0].mxu1 }
 0x1b3   :  { %v197_v30 = vadd.f32 %v335_v28, %v196_v29  ;;  %v397_v31 = vpop.f32.mrb[1].mxu1 }
 0x1b4   :  { %v199_v32 = vpop.f32.mrb[2].mxu1 }
 0x1b5   :  { %v202_v33 = vmax.f32 %v197_v30, 0.0  ;;  %v398_v34 = vpop.f32.mrb[3].mxu1 }
 0x1b7   :  { %v203_v35 = vpack.c.bf16 %v202_v33, %v202_v33 }
 0x1b9   :  { %416 = vmatmul.mubr.bf16.vlgmr.msra.gmra.mrb[4].mxu0 %v203_v35 }
 0x28c   :  { %v309_v37 = vpop.f32.mrb[4].mxu0 }
 0x28d   :  { %v310_v38 = vadd.f32 %v344_v36, %v309_v37  ;;  %v417_v39 = vpop.f32.mrb[5].mxu0 }
 0x28e   :  { %v312_v40 = vpop.f32.mrb[6].mxu0 }
 0x28f   :  { %v315_v41 = vmax.f32 %v310_v38, 0.0  ;;  %v418_v42 = vpop.f32.mrb[7].mxu0 }
 0x291   :  { %317 = vst.msk [vmem:[#allocation2] sm:$0x3] %vm316_vm2, %v315_v41 }
 0x292   :  { %450 = shalt.err (!%p447_p4)
}
 0x293   :  { %s451_s16 = scalar_lea.hbm %s608_s7, 32 }
 0x294   :  { %p452_p5 = scmp.ne.s32.totalorder %s608_s7, %s451_s16  ;;  %p455_p6 = scmp.lt.u32.totalorder %s451_s16, %s608_s7 }
 0x296   :  { %p457_p7 = pnand %p455_p6, %p452_p5 }
 0x298   :  { %460 = shalt.err (!%p457_p7)
}
 0x299   :  { %327 = dma.vmem_to_hbm [thread:$0]  %s325_s5, 32, %s608_s7, [#allocation3]  }
 0x29a   :  { %461 = dma.done.wait [#allocation3], 32  }
 0x29b   :  { %462 = vsyncadd [#allocation3], 4294967264 }
 0x29c   :  { %331 = vsyncpa [#allocation3], 1 }

</bundles_post_ra>
